<compile_context>
chip_gen: v5e
topology: v5e:2x2
jax: 0.10.0
libtpu: 0.0.40
codegen_flags: <defaults>
</compile_context>

<pallas_src>
import jax
import jax.numpy as jnp
from jax.experimental import pallas as pl
from jax.experimental.pallas import tpu as pltpu


def _round_up(x, m):
    return (x + m - 1) // m * m


# ----------------------------------------------------------------------------
# Pass 1: tiled bf16 MXU matmul + per-tile BN partial sums
# ----------------------------------------------------------------------------
def _matmul_stats_kernel(x_ref, w_ref, y_ref, stats_ref):
    # (tile_n, K*Cin) @ (K*Cin, Cout_pad) -> f32 accumulation on the MXU.
    acc = jnp.dot(x_ref[...], w_ref[...], preferred_element_type=jnp.float32)
    y_ref[...] = acc

    # Per-tile partials for BatchNorm: row 0 = sum, row 1 = sum of squares.
    s1 = jnp.sum(acc, axis=0, keepdims=True)            # (1, Cout_pad)
    s2 = jnp.sum(acc * acc, axis=0, keepdims=True)       # (1, Cout_pad)
    row = jax.lax.broadcasted_iota(jnp.int32, (8, acc.shape[1]), 0)
    blk = jnp.where(row == 0, s1, jnp.where(row == 1, s2, 0.0))
    stats_ref[...] = blk[None]                            # (1, 8, Cout_pad)


def _matmul_stats_call(x_bf16, w_bf16, *, tile_n):
    N_pad, KC = x_bf16.shape
    Cout_pad = w_bf16.shape[-1]
    num_tiles = N_pad // tile_n
    flops = 2 * N_pad * KC * Cout_pad
    bytes_accessed = (N_pad * KC * 2 + KC * Cout_pad * 2
                      + N_pad * Cout_pad * 4 + num_tiles * 8 * Cout_pad * 4)
    return pl.pallas_call(
        _matmul_stats_kernel,
        out_shape=(
            jax.ShapeDtypeStruct((N_pad, Cout_pad), jnp.float32),
            jax.ShapeDtypeStruct((num_tiles, 8, Cout_pad), jnp.float32),
        ),
        grid_spec=pltpu.PrefetchScalarGridSpec(
            num_scalar_prefetch=0,
            grid=(num_tiles,),
            in_specs=[
                pl.BlockSpec((tile_n, KC), lambda i: (i, 0)),
                # Weight is block-constant: DMA'd once, VMEM-resident across all tiles.
                pl.BlockSpec((KC, Cout_pad), lambda i: (0, 0)),
            ],
            out_specs=[
                pl.BlockSpec((tile_n, Cout_pad), lambda i: (i, 0)),
                pl.BlockSpec((1, 8, Cout_pad), lambda i: (i, 0, 0)),
            ],
        ),
        compiler_params=pltpu.CompilerParams(dimension_semantics=("parallel",)),
        cost_estimate=pl.CostEstimate(flops=flops, transcendentals=0,
                                      bytes_accessed=bytes_accessed),
    )(x_bf16, w_bf16)


# ----------------------------------------------------------------------------
# Pass 2: elementwise BN affine (precomputed scale/shift) + ReLU
# ----------------------------------------------------------------------------
def _bn_relu_kernel(y_ref, scale_ref, shift_ref, o_ref):
    o_ref[...] = jnp.maximum(y_ref[...] * scale_ref[...] + shift_ref[...], 0.0)


def _bn_relu_call(y, scale, shift, *, tile_n):
    N_pad, Cout_pad = y.shape
    num_tiles = N_pad // tile_n
    bytes_accessed = 2 * N_pad * Cout_pad * 4 + 2 * Cout_pad * 4
    return pl.pallas_call(
        _bn_relu_kernel,
        out_shape=jax.ShapeDtypeStruct((N_pad, Cout_pad), jnp.float32),
        grid_spec=pltpu.PrefetchScalarGridSpec(
            num_scalar_prefetch=0,
            grid=(num_tiles,),
            in_specs=[
                pl.BlockSpec((tile_n, Cout_pad), lambda i: (i, 0)),
                pl.BlockSpec((1, Cout_pad), lambda i: (0, 0)),
                pl.BlockSpec((1, Cout_pad), lambda i: (0, 0)),
            ],
            out_specs=pl.BlockSpec((tile_n, Cout_pad), lambda i: (i, 0)),
        ),
        compiler_params=pltpu.CompilerParams(dimension_semantics=("parallel",)),
        cost_estimate=pl.CostEstimate(flops=2 * N_pad * Cout_pad, transcendentals=0,
                                      bytes_accessed=bytes_accessed),
    )(y, scale, shift)


# ----------------------------------------------------------------------------
# Glue: sort/searchsorted kernel-map construction (plain JAX, O(K N log N))
# ----------------------------------------------------------------------------
def build_kernel_map(coords, ks=3, dilation=1):
    """coords: (N, 4) int32 [batch, x, y, z].

    Returns (idx, found) with shape (N, K): idx[i, k] is the index j such that
    coords[j] == coords[i] + offset_k * dilation (same batch); found[i, k] says whether
    such an active input point exists. Built directly in (N, K) order so the gathered
    features reshape contiguously to (N, K*Cin).
    """
    r = ks // 2
    pad = r * dilation
    c = coords.astype(jnp.int32)
    c0 = c - jnp.min(c, axis=0)                       # nonnegative per column
    ext = jnp.max(c0, axis=0) + 1
    sx = ext[1] + 2 * pad
    sy = ext[2] + 2 * pad
    sz = ext[3] + 2 * pad

    def pack(cc):
        # NOTE: int32 packing; safe for demo-scale extents (see TODO for large scenes).
        return ((cc[..., 0] * sx + cc[..., 1]) * sy + cc[..., 2]) * sz + cc[..., 3]

    base = c0.at[:, 1:].add(pad)                      # halo shift keeps targets >= 0
    keys = pack(base)                                 # (N,)
    order = jnp.argsort(keys)
    sorted_keys = keys[order]

    ax = jnp.arange(ks, dtype=jnp.int32) - r
    offs = jnp.stack(jnp.meshgrid(ax, ax, ax, indexing="ij"), axis=-1).reshape(-1, 3)
    offs = offs * dilation                            # (K, 3)
    K = offs.shape[0]
    off4 = jnp.concatenate([jnp.zeros((K, 1), jnp.int32), offs], axis=1)   # (K, 4)

    tgt = base[:, None, :] + off4[None, :, :]         # (N, K, 4)
    tkeys = pack(tgt)                                 # (N, K)
    pos = jnp.clip(jnp.searchsorted(sorted_keys, tkeys), 0, keys.shape[0] - 1)
    found = sorted_keys[pos] == tkeys                 # (N, K)
    idx = order[pos]                                  # (N, K)
    return idx, found


# ----------------------------------------------------------------------------
# One-time parameter prep (hoisted out of the per-forward path)
# ----------------------------------------------------------------------------
def prepare_params(weight, gamma, beta):
    """weight: (K, Cin, Cout); gamma/beta: (1, Cout). Pads Cout to a 128 multiple and
    casts the folded weight to bf16 once."""
    K, Cin, Cout = weight.shape
    Cout_pad = max(128, _round_up(Cout, 128))
    w = weight.reshape(K * Cin, Cout).astype(jnp.bfloat16)
    w_pad = jnp.zeros((K * Cin, Cout_pad), jnp.bfloat16).at[:, :Cout].set(w)
    g_pad = jnp.ones((1, Cout_pad), jnp.float32).at[:, :Cout].set(gamma.astype(jnp.float32))
    b_pad = jnp.zeros((1, Cout_pad), jnp.float32).at[:, :Cout].set(beta.astype(jnp.float32))
    return {"w": w_pad, "gamma": g_pad, "beta": b_pad, "K": K, "Cin": Cin, "Cout": Cout}


# ----------------------------------------------------------------------------
# Full BasicConvolutionBlock forward (stride=1 path)
# ----------------------------------------------------------------------------
def basic_convolution_block(features, coords, params, *, ks=3, dilation=1, eps=1e-5,
                            tile_n_max=1024):
    """features: (N, Cin) f32; coords: (N, 4) int32; params from prepare_params().
    Returns (N, Cout) f32."""
    N, Cin = features.shape
    K, Cout = params["K"], params["Cout"]
    KC = K * Cin

    # Kernel map + gather directly in (N, K, Cin) order (contiguous reshape, no transpose).
    idx, found = build_kernel_map(coords, ks=ks, dilation=dilation)
    gathered = jnp.where(found[..., None], features[idx], 0.0)        # (N, K, Cin)
    fused = gathered.reshape(N, KC).astype(jnp.bfloat16)

    # N tiling (padded rows are zero -> contribute 0 to BN sums; sliced off at the end).
    tile_n = min(tile_n_max, _round_up(N, 16))
    N_pad = _round_up(N, tile_n)
    if N_pad != N:
        fused = jnp.zeros((N_pad, KC), jnp.bfloat16).at[:N].set(fused)

    # Pass 1: tiled matmul + per-tile sum / sum-of-squares.
    y, stats = _matmul_stats_call(fused, params["w"], tile_n=tile_n)

    # Exact batch statistics from the tiny per-tile partials (divide by the real N).
    total_sum = jnp.sum(stats[:, 0, :], axis=0, keepdims=True)         # (1, Cout_pad)
    total_sq = jnp.sum(stats[:, 1, :], axis=0, keepdims=True)          # (1, Cout_pad)
    mean = total_sum / N
    var = jnp.maximum(total_sq / N - mean * mean, 0.0)                  # biased batch var
    inv = jax.lax.rsqrt(var + eps)
    scale = params["gamma"] * inv
    shift = params["beta"] - mean * scale

    # Pass 2: lane-dense elementwise BN affine + ReLU(inplace=True).
    out = _bn_relu_call(y, scale, shift, tile_n=tile_n)
    return out[:N, :Cout]


# ----------------------------------------------------------------------------
# Pure-JAX reference (independent brute-force kernel map; bf16-cast operands)
# ----------------------------------------------------------------------------
def reference(features, coords, weight, gamma, beta, *, ks=3, dilation=1, eps=1e-5):
    r = ks // 2
    ax = jnp.arange(ks, dtype=jnp.int32) - r
    offs = jnp.stack(jnp.meshgrid(ax, ax, ax, indexing="ij"), axis=-1).reshape(-1, 3)
    offs = offs * dilation
    K = offs.shape[0]
    off4 = jnp.concatenate([jnp.zeros((K, 1), jnp.int32), offs], axis=1)
    target = coords[None, :, :] + off4[:, None, :]
    eq = jnp.all(target[:, :, None, :] == coords[None, None, :, :], axis=-1)
    valid = jnp.any(eq, axis=-1)
    idx = jnp.argmax(eq, axis=-1)
    gathered = jnp.where(valid[..., None], features[idx], 0.0)
    g16 = gathered.astype(jnp.bfloat16).astype(jnp.float32)
    w16 = weight.astype(jnp.bfloat16).astype(jnp.float32)
    x = jnp.einsum("kni,kio->no", g16, w16)
    mean = x.mean(axis=0, keepdims=True)
    var = jnp.mean(jnp.square(x - mean), axis=0, keepdims=True)
    y = (x - mean) / jnp.sqrt(var + eps) * gamma + beta
    return jnp.maximum(y, 0.0)


if __name__ == "__main__":
    # Small, module-consistent shapes: ks=3 sparse conv, inc=16 -> outc=32, N=200 points.
    N, INC, OUTC, KS, DIL = 200, 16, 32, 3, 1
    K = KS ** 3

    key = jax.random.PRNGKey(0)
    k_feat, k_w, k_g, k_b, k_c0, k_c1 = jax.random.split(key, 6)

    features = jax.random.normal(k_feat, (N, INC), dtype=jnp.float32)

    # Unique voxel coords per batch (2 batches, 8^3 grid) -> well-defined kernel map
    # (avoids the duplicate-coordinate tie-break hazard).
    n0 = N // 2
    n1 = N - n0
    grid = 8
    cells0 = jax.random.permutation(k_c0, grid ** 3)[:n0]
    cells1 = jax.random.permutation(k_c1, grid ** 3)[:n1]

    def unpack(cells):
        x = cells // (grid * grid)
        y = (cells // grid) % grid
        z = cells % grid
        return jnp.stack([x, y, z], axis=1).astype(jnp.int32)

    coords = jnp.concatenate([
        jnp.concatenate([jnp.zeros((n0, 1), jnp.int32), unpack(cells0)], axis=1),
        jnp.concatenate([jnp.ones((n1, 1), jnp.int32), unpack(cells1)], axis=1),
    ], axis=0)                                                     # (N, 4)

    # Deterministic parameter init (shapes per spnn.Conv3d / BatchNorm1d __init__).
    fan_in = K * INC
    weight = jax.random.normal(k_w, (K, INC, OUTC), dtype=jnp.float32) * (2.0 / fan_in) ** 0.5
    gamma = 1.0 + 0.1 * jax.random.normal(k_g, (1, OUTC), dtype=jnp.float32)
    beta = 0.1 * jax.random.normal(k_b, (1, OUTC), dtype=jnp.float32)

    params = prepare_params(weight, gamma, beta)

    # tile_n_max=64 -> 4-tile padded grid, exercising the tiled + partial-stats path
    # at demo size (production default is tile_n_max=1024).
    out = basic_convolution_block(features, coords, params, ks=KS, dilation=DIL,
                                  tile_n_max=64)
    out = jax.block_until_ready(out)

    ref = reference(features, coords, weight, gamma, beta, ks=KS, dilation=DIL)
    assert out.shape == (N, OUTC)
    assert jnp.allclose(out, ref, atol=5e-3, rtol=5e-3), "mismatch vs reference"

    print("KERNEL_OK")
</pallas_src>

<mosaic_0001>
module attributes {stable_mosaic.version = 11 : i64} {
  func.func @_matmul_stats_kernel(%arg0: i32, %arg1: memref<64x432xbf16, #tpu.memory_space<vmem>>, %arg2: memref<432x128xbf16, #tpu.memory_space<vmem>>, %arg3: memref<64x128xf32, #tpu.memory_space<vmem>>, %arg4: memref<1x8x128xf32, #tpu.memory_space<vmem>>) attributes {dimension_semantics = [#tpu.dimension_semantics<parallel>], iteration_bounds = array<i64: 4>, scalar_prefetch = 0 : i64, scratch_operands = 0 : i64, tpu.core_type = #tpu.core_type<tc>, window_params = [{transform_indices = @transform_0, window_bounds = array<i64: 64, 432>}, {pipeline_mode = #tpu.pipeline_mode<synchronous>, transform_indices = @transform_1, window_bounds = array<i64: 432, 128>}, {transform_indices = @transform_2, window_bounds = array<i64: 64, 128>}, {transform_indices = @transform_3, window_bounds = array<i64: 1, 8, 128>}]} {
    %c0 = arith.constant 0 : index
    %c0_0 = arith.constant 0 : index
    %0 = vector.load %arg1[%c0, %c0_0] : memref<64x432xbf16, #tpu.memory_space<vmem>>, vector<64x432xbf16>
    %c0_1 = arith.constant 0 : index
    %c0_2 = arith.constant 0 : index
    %1 = vector.load %arg2[%c0_1, %c0_2] : memref<432x128xbf16, #tpu.memory_space<vmem>>, vector<432x128xbf16>
    %cst = arith.constant dense<0.000000e+00> : vector<64x128xf32>
    %2 = tpu.matmul %0, %1, %cst {dimension_numbers = #tpu.dot_dimension_numbers<[1], [0], [0], [1], [0, 0, 1, 1], [], []>} : vector<64x432xbf16>, vector<432x128xbf16>, vector<64x128xf32> -> vector<64x128xf32>
    %c0_3 = arith.constant 0 : index
    %c0_4 = arith.constant 0 : index
    %3 = vector.load %arg3[%c0_3, %c0_4] : memref<64x128xf32, #tpu.memory_space<vmem>>, vector<64x128xf32>
    tpu.vector_store %arg3[%c0_3, %c0_4], %2 {strides = array<i32>} : memref<64x128xf32, #tpu.memory_space<vmem>>, vector<64x128xf32>,
    %cst_5 = arith.constant dense<0.000000e+00> : vector<128xf32>
    %4 = vector.multi_reduction <add>, %2, %cst_5 [0] : vector<64x128xf32> to vector<128xf32>
    %5 = vector.shape_cast %4 : vector<128xf32> to vector<1x128xf32>
    %6 = arith.mulf %2, %2 : vector<64x128xf32>
    %cst_6 = arith.constant dense<0.000000e+00> : vector<128xf32>
    %7 = vector.multi_reduction <add>, %6, %cst_6 [0] : vector<64x128xf32> to vector<128xf32>
    %8 = vector.shape_cast %7 : vector<128xf32> to vector<1x128xf32>
    %9 = tpu.iota {dimensions = array<i32: 0>} : vector<8x128xi32>
    %c0_i32 = arith.constant 0 : i32
    %10 = vector.broadcast %c0_i32 : i32 to vector<8x128xi32>
    %11 = arith.cmpi eq, %9, %10 : vector<8x128xi32>
    %c1_i32 = arith.constant 1 : i32
    %12 = vector.broadcast %c1_i32 : i32 to vector<8x128xi32>
    %13 = arith.cmpi eq, %9, %12 : vector<8x128xi32>
    %cst_7 = arith.constant 0.000000e+00 : f32
    %14 = vector.shape_cast %8 : vector<1x128xf32> to vector<1x128xf32>
    %15 = vector.broadcast %14 : vector<1x128xf32> to vector<8x128xf32>
    %16 = vector.broadcast %cst_7 : f32 to vector<8x128xf32>
    %17 = arith.select %13, %15, %16 : vector<8x128xi1>, vector<8x128xf32>
    %18 = vector.shape_cast %5 : vector<1x128xf32> to vector<1x128xf32>
    %19 = vector.broadcast %18 : vector<1x128xf32> to vector<8x128xf32>
    %20 = arith.select %11, %19, %17 : vector<8x128xi1>, vector<8x128xf32>
    %21 = vector.shape_cast %20 : vector<8x128xf32> to vector<1x8x128xf32>
    %c0_8 = arith.constant 0 : index
    %c0_9 = arith.constant 0 : index
    %c0_10 = arith.constant 0 : index
    %22 = vector.load %arg4[%c0_8, %c0_9, %c0_10] : memref<1x8x128xf32, #tpu.memory_space<vmem>>, vector<1x8x128xf32>
    tpu.vector_store %arg4[%c0_8, %c0_9, %c0_10], %21 {strides = array<i32>} : memref<1x8x128xf32, #tpu.memory_space<vmem>>, vector<1x8x128xf32>,
    return
  }
  func.func @transform_0(%arg0: i32) -> (i32, i32) {
    %c0_i32 = arith.constant 0 : i32
    %c0_i32_0 = arith.constant 0 : i32
    return %arg0, %c0_i32 : i32, i32
  }
  func.func @transform_1(%arg0: i32) -> (i32, i32) {
    %c0_i32 = arith.constant 0 : i32
    %c0_i32_0 = arith.constant 0 : i32
    %c0_i32_1 = arith.constant 0 : i32
    return %c0_i32, %c0_i32_0 : i32, i32
  }
  func.func @transform_2(%arg0: i32) -> (i32, i32) {
    %c0_i32 = arith.constant 0 : i32
    %c0_i32_0 = arith.constant 0 : i32
    return %arg0, %c0_i32 : i32, i32
  }
  func.func @transform_3(%arg0: i32) -> (i32, i32, i32) {
    %c0_i32 = arith.constant 0 : i32
    %c0_i32_0 = arith.constant 0 : i32
    %c0_i32_1 = arith.constant 0 : i32
    return %arg0, %c0_i32, %c0_i32_0 : i32, i32, i32
  }
}

</mosaic_0001>

<bundles_post_ra>
// kernel: tpu_custom_call.1
= control target key start
LH: loop header
LB: loop body
LE: loop exit
PB: predicated region body
PF: predicated region fallthrough
CT: control target
= control target key end

     0   :  { %9 = vsyncpa [#allocation3], 0  ;;  %s1442_s0 = inlined_call_operand.vmem [shape: bf16[256,432], index: 0, kind: input, shape index: {}]   ;;  %s1443_s1 = inlined_call_operand.vmem [shape: bf16[432,128], index: 1, kind: input, shape index: {}]   ;;  %s1444_s2 = inlined_call_operand.hbm [shape: f32[256,128], index: 2, kind: output, shape index: {0}]   ;;  %s1445_s3 = inlined_call_operand.hbm [shape: f32[4,8,128], index: 3, kind: output, shape index: {1}]  }
   0x1   :  { %11 = vsyncpa [#allocation3 + $0x1], 0 }
   0x2   :  { %12 = vsyncpa [#allocation5], 0 }
   0x3   :  { %14 = vsyncpa [#allocation5 + $0x1], 0  ;;  %s1204_s12 = smov 0   ;;  %s1206_s13 = smov 0  }
   0x4   :  { %s1208_s14 = smov 0   ;;  %s1210_s15 = smov 0  }
   0x5 LB: > { %s1225_s16 = sadd.s32 4294967295, %s1180_s15   ;;  %s803_s17 = sadd.s32 4294967294, %s1180_s15   ;;  %s1180_s15 = sphi %s1210_s15, %s1451_s15   ;;  %s1176_s14 = sphi %s1208_s14, %s1450_s14   ;;  %s1172_s13 = sphi %s1206_s13, %s1449_s13   ;;  %s1168_s12 = sphi %s1204_s12, %s1448_s12  }
   0x6   : > { %s1229_s18 = sadd.s32 1, %s1180_s15   ;;  %s74_s19 = sadd.s32 1, %s1176_s14 }
   0x7   : > { %s71_s20 = ssub.s32 %s1180_s15, %s1229_s18  ;;  %p84_p0 = scmp.ne.s32.totalorder %s1176_s14, %s1172_s13 }
   0x8   : > { %p72_p1 = scmp.eq.s32.totalorder %s71_s20, 0  ;;  %p85_p2 = scmp.eq.s32.totalorder %s1225_s16, 3 }
   0x9   : > { %p90_p3 = scmp.ne.s32.totalorder %s1172_s13, %s1168_s12  ;;  %p91_p4 = scmp.eq.s32.totalorder %s803_s17, 3 }
   0xa   : > { %s1240_s21 = scalar_select %p72_p1, %s1176_s14, %s74_s19  }
   0xb   : > { %p1242_p5 = por %p85_p2, %p84_p0  ;;  %p1246_p6 = por %p91_p4, %p90_p3 }
   0xc   : > { %p806_p7 = scmp.ge.s32.totalorder %s1180_s15, 1  ;;  %p148_p8 = scmp.lt.s32.totalorder %s1180_s15, 5 }
   0xe   : > { %p149_p9 = pnand %p806_p7, %p148_p8 }
   0xf   : > { %s1262_s30 = sshll.u32 (!%p149_p9), %s1225_s16, 3  ;;  %s1380_s8 = sand.u32 (!%p149_p9), 1, %s1172_s13  }
  0x10   : > { %152 = sbr.rel (%p149_p9) target bundleno = 268 (0x10c), region = 28  ;;  %p179_p10 = scmp.lt.s32.totalorder (!%p149_p9), %s1262_s30, 31 }
  0x11   : > { %s807_s9 = sshll.u32 (!%p149_p9), %s1380_s8, 6  ;;  %s674_s24 = scalar_lea.sflag (!%p149_p9), [#allocation3], %s1380_s8 }
  0x12   : > { %s1106_s29 = scalar_lea.hbm (!%p149_p9), %s1444_s2, 256 }
  0x15   : > { %v1019_v0 = vld [vmem:[%s1443_s1 + $0x38] sm:$0xff]  ;;  %v1018_v3 = vld [vmem:[%s1443_s1 + $0x30] sm:$0xff]  ;;  %s180_s10 = scalar_select %p179_p10, %s1262_s30, 31  ;;  %v1017_v7 = vld [vmem:[%s1443_s1 + $0x28] sm:$0xff]  ;;  %vm495_vm0 = vcmask 392192  }
  0x16   : > { %v1027_v1 = vld [vmem:[%s1443_s1 + $0x78] sm:$0xff]  ;;  %508 = vmatpush.bf16.msra.mxu0 %v1019_v0  ;;  %v1026_v4 = vld [vmem:[%s1443_s1 + $0x70] sm:$0xff]  ;;  %v1025_v8 = vld [vmem:[%s1443_s1 + $0x68] sm:$0xff] }
  0x17   : > { %v1035_v2 = vld [vmem:[%s1443_s1 + $0xb8] sm:$0xff]  ;;  %537 = vmatpush.bf16.msra.mxu1 %v1027_v1  ;;  %v1034_v5 = vld [vmem:[%s1443_s1 + $0xb0] sm:$0xff]  ;;  %s995_s26 = sshll.u32 %s180_s10, 4  ;;  %v1033_v9 = vld [vmem:[%s1443_s1 + $0xa8] sm:$0xff]  ;;  %s1039_s10 = sshll.u32 %s1225_s16, 6 }
  0x18   : > { %566 = vmatpush.bf16.msra.mxu2 %v1035_v2  ;;  %v1038_v6 = vld [vmem:[%s1443_s1 + $0xd0] sm:$0xff]  ;;  %v1037_v10 = vld [vmem:[%s1443_s1 + $0xc8] sm:$0xff]  ;;  %s1293_s7 = scalar_lea.vmem %s1442_s0, %s995_s26  ;;  %v1016_v11 = vld [vmem:[%s1443_s1 + $0x20] sm:$0xff]  ;;  %s690_s19 = scalar_lea.hbm %s1444_s2, %s1039_s10 }
  0x19   : > { %600 = vmatpush.bf16.msra.mxu3 %v1038_v6  ;;  %v1024_v12 = vld [vmem:[%s1443_s1 + $0x60] sm:$0xff]  ;;  %v997_v15 = vld [vmem:[%s1293_s7 + $0xc] sm:$0xf]  ;;  %v824_v16 = vld [vmem:[%s1293_s7 + $0x18] sm:$0xf0]  ;;  %s693_s20 = sshll.u32 %s690_s19, 4  ;;  %s694_s20 = int_to_ptr.hbm [resolvable:$true] %s693_s20 }
  0x1a   : > { %509 = vmatpush.bf16.msra.mxu0 %v1018_v3  ;;  %v1032_v13 = vld [vmem:[%s1443_s1 + $0xa0] sm:$0xff]  ;;  %v1015_v17 = vld [vmem:[%s1443_s1 + $0x18] sm:$0xff]  ;;  %v827_v20 = vor.u32 %v997_v15, %v824_v16  ;;  %v1014_v21 = vld [vmem:[%s1443_s1 + $0x10] sm:$0xff]  ;;  %s1100_s25 = sshra.s32 %s694_s20, 4  ;;  %s1101_s25 = int_to_ptr.hbm [resolvable:$true] %s1100_s25 }
  0x1b   : > { %538 = vmatpush.bf16.msra.mxu1 %v1026_v4  ;;  %v1036_v14 = vld [vmem:[%s1443_s1 + $0xc0] sm:$0xff]  ;;  %v1023_v18 = vld [vmem:[%s1443_s1 + $0x58] sm:$0xff]  ;;  %v1022_v22 = vld [vmem:[%s1443_s1 + $0x50] sm:$0xff]  ;;  %s1102_s26 = scalar_lea.hbm %s1101_s25, 64  ;;  %p1107_p0 = scmp.lt.s32.totalorder %s1101_s25, %s1444_s2 }
  0x1c   : > { %567 = vmatpush.bf16.msra.mxu2 %v1034_v5  ;;  %v1031_v19 = vld [vmem:[%s1443_s1 + $0x98] sm:$0xff]  ;;  %v1030_v23 = vld [vmem:[%s1443_s1 + $0x90] sm:$0xff]  ;;  %v1013_v24 = vld [vmem:[%s1443_s1 + $0x8] sm:$0xff]  ;;  %p1103_p11 = scmp.ne.s32.totalorder %s1101_s25, %s1102_s26  ;;  %p1108_p1 = scmp.lt.s32.totalorder %s1106_s29, %s1102_s26 }
  0x1d   : > { %601 = vmatpush.bf16.msra.mxu3 %v1037_v10  ;;  %v1021_v25 = vld [vmem:[%s1443_s1 + $0x48] sm:$0xff]  ;;  %v1012_v27 = vld [vmem:[%s1443_s1] sm:$0xff]  ;;  %v998_v30 = vld [vmem:[%s1293_s7 + $0xc] sm:$0xf0] }
  0x1e   : > { %510 = vmatpush.bf16.msra.mxu0 %v1017_v7  ;;  %v1029_v26 = vld [vmem:[%s1443_s1 + $0x88] sm:$0xff]  ;;  %v1020_v28 = vld [vmem:[%s1443_s1 + $0x40] sm:$0xff]  ;;  %v816_v32 = vld [vmem:[%s1293_s7 + $0x10] sm:$0xf0]  ;;  %p1104_p12 = pnand %p1103_p11, %p1242_p5  ;;  %p1109_p2 = por %p1108_p1, %p1107_p0 }
  0x1f   : > { %539 = vmatpush.bf16.msra.mxu1 %v1025_v8  ;;  %v814_v29 = vld [vmem:[%s1293_s7] sm:$0xf]  ;;  %v996_v31 = vld [vmem:[%s1293_s7 + $0x4] sm:$0xf]  ;;  %v822_v34 = vld [vmem:[%s1293_s7 + $0x8] sm:$0xf] }
  0x20   : > { %568 = vmatpush.bf16.msra.mxu2 %v1033_v9  ;;  %v1028_v33 = vld [vmem:[%s1443_s1 + $0x80] sm:$0xff]  ;;  %v999_v35 = vld [vmem:[%s1293_s7 + $0x14] sm:$0xf0]  ;;  %v1001_v36 = vld [vmem:[%s1293_s7 + $0x2c] sm:$0xf]  ;;  %v815_v38 = vor.u32 %v998_v30, %v814_v29  ;;  %v819_v39 = vor.u32 %v996_v31, %v816_v32  ;;  %p1105_p13 = pneg %p1104_p12 }
  0x21   : > { %602 = vmatpush.bf16.msra.mxu3 %v1036_v14  ;;  %v840_v37 = vld [vmem:[%s1293_s7 + $0x38] sm:$0xf0]  ;;  %v823_v40 = vor.u32 %v999_v35, %v822_v34  ;;  %v830_v42 = vld [vmem:[%s1293_s7 + $0x20] sm:$0xf]  ;;  %v1002_v43 = vld [vmem:[%s1293_s7 + $0x2c] sm:$0xf0] }
  0x22   : > { %511 = vmatpush.bf16.msra.mxu0 %v1016_v11  ;;  %v843_v41 = vor.u32 %v1001_v36, %v840_v37  ;;  %v1000_v44 = vld [vmem:[%s1293_s7 + $0x24] sm:$0xf]  ;;  %v832_v45 = vld [vmem:[%s1293_s7 + $0x30] sm:$0xf0]  ;;  %v838_v46 = vld [vmem:[%s1293_s7 + $0x28] sm:$0xf]  ;;  %v831_v50 = vor.u32 %v1002_v43, %v830_v42  ;;  %p1110_p3 = pnand %p1109_p2, %p1105_p13 }
  0x23   : > { %540 = vmatpush.bf16.msra.mxu1 %v1024_v12  ;;  %v1003_v47 = vld [vmem:[%s1293_s7 + $0x34] sm:$0xf0]  ;;  %v1005_v48 = vld [vmem:[%s1293_s7 + $0x4c] sm:$0xf]  ;;  %v856_v49 = vld [vmem:[%s1293_s7 + $0x58] sm:$0xf0]  ;;  %v835_v51 = vor.u32 %v1000_v44, %v832_v45 }
  0x24   : > { %569 = vmatpush.bf16.msra.mxu2 %v1032_v13  ;;  %984 = vmatmul.msk.bf16.vlgmr.msra.gmra.mxu3 %vm495_vm0, %v827_v20  ;;  %v839_v52 = vor.u32 %v1003_v47, %v838_v46  ;;  %v859_v53 = vor.u32 %v1005_v48, %v856_v49  ;;  %v846_v54 = vld [vmem:[%s1293_s7 + $0x40] sm:$0xf]  ;;  %v1006_v55 = vld [vmem:[%s1293_s7 + $0x4c] sm:$0xf0]  ;;  %v1004_v56 = vld [vmem:[%s1293_s7 + $0x44] sm:$0xf] }
  0x25   : > { %v848_v57 = vld [vmem:[%s1293_s7 + $0x50] sm:$0xf0]  ;;  %v854_v58 = vld [vmem:[%s1293_s7 + $0x48] sm:$0xf]  ;;  %v1007_v59 = vld [vmem:[%s1293_s7 + $0x54] sm:$0xf0]  ;;  %v847_v62 = vor.u32 %v1006_v55, %v846_v54 }
  0x26   : > { %512 = vmatpush.bf16.msra.mxu0 %v1015_v17  ;;  %v1009_v60 = vld [vmem:[%s1293_s7 + $0x6c] sm:$0xf]  ;;  %v872_v61 = vld [vmem:[%s1293_s7 + $0x78] sm:$0xf0]  ;;  %v851_v63 = vor.u32 %v1004_v56, %v848_v57  ;;  %v855_v0 = vor.u32 %v1007_v59, %v854_v58  ;;  %v862_v2 = vld [vmem:[%s1293_s7 + $0x60] sm:$0xf] }
  0x27   : > { %541 = vmatpush.bf16.msra.mxu1 %v1023_v18  ;;  %v875_v1 = vor.u32 %v1009_v60, %v872_v61  ;;  %v1010_v3 = vld [vmem:[%s1293_s7 + $0x6c] sm:$0xf0]  ;;  %v1008_v4 = vld [vmem:[%s1293_s7 + $0x64] sm:$0xf]  ;;  %v864_v5 = vld [vmem:[%s1293_s7 + $0x70] sm:$0xf0] }
  0x28   : > { %570 = vmatpush.bf16.msra.mxu2 %v1031_v19  ;;  %v870_v6 = vld [vmem:[%s1293_s7 + $0x68] sm:$0xf]  ;;  %v1011_v7 = vld [vmem:[%s1293_s7 + $0x74] sm:$0xf0]  ;;  %v863_v8 = vor.u32 %v1010_v3, %v862_v2  ;;  %v867_v9 = vor.u32 %v1008_v4, %v864_v5  ;;  %s1383_s7 = scalar_lea.vmem [#allocation2], %s807_s9 }
  0x29   : > { %v871_v10 = vor.u32 %v1011_v7, %v870_v6  ;;  %s691_s16 = sshll.u32 %s1383_s7, 4  ;;  %s692_s16 = int_to_ptr.vmem [resolvable:$true] %s691_s16 }
  0x2a   : > { %513 = vmatpush.bf16.msra.mxu0 %v1014_v21 }
  0x2b   : > { %542 = vmatpush.bf16.msra.mxu1 %v1022_v22 }
  0x2c   : > { %571 = vmatpush.bf16.msra.mxu2 %v1030_v23 }
  0x2e   : > { %514 = vmatpush.bf16.msra.mxu0 %v1013_v24 }
  0x2f   : > { %543 = vmatpush.bf16.msra.mxu1 %v1021_v25 }
  0x30   : > { %572 = vmatpush.bf16.msra.mxu2 %v1029_v26 }
  0x32   : > { %515 = vmatpush.bf16.msra.mxu0 %v1012_v27 }
  0x33   : > { %544 = vmatpush.bf16.msra.mxu1 %v1020_v28 }
  0x34   : > { %573 = vmatpush.bf16.msra.mxu2 %v1028_v33  ;;  %985 = vmatmul.msk.bf16.gmra.mxu3 %vm495_vm0, %v843_v41 }
  0x35   : > { %516 = vmatmul.bf16.vlgmr.msra.gmra.mxu0 %v815_v38 }
  0x36   : > { %545 = vmatmul.bf16.vlgmr.msra.gmra.mxu1 %v819_v39 }
  0x37   : > { %574 = vmatmul.bf16.vlgmr.msra.gmra.mxu2 %v823_v40 }
  0x44   : > { %986 = vmatmul.msk.bf16.gmra.mxu3 %vm495_vm0, %v859_v53 }
  0x45   : > { %521 = vmatmul.bf16.gmra.mxu0 %v831_v50 }
  0x46   : > { %550 = vmatmul.bf16.gmra.mxu1 %v835_v51 }
  0x47   : > { %579 = vmatmul.bf16.gmra.mxu2 %v839_v52 }
  0x54   : > { %987 = vmatmul.msk.bf16.gmra.mxu3 %vm495_vm0, %v875_v1 }
  0x55   : > { %526 = vmatmul.bf16.gmra.mxu0 %v847_v62 }
  0x56   : > { %555 = vmatmul.bf16.gmra.mxu1 %v851_v63 }
  0x57   : > { %584 = vmatmul.bf16.gmra.mxu2 %v855_v0 }
  0x65   : > { %531 = vmatmul.bf16.gmra.mxu0 %v863_v8 }
  0x66   : > { %560 = vmatmul.bf16.gmra.mxu1 %v867_v9 }
  0x67   : > { %589 = vmatmul.bf16.gmra.mxu2 %v871_v10 }
  0xa7   : > { %v604_v11 = vpop.f32.mrf.mxu3 }
  0xaf   : > { %v606_v15 = vpop.f32.mrf.mxu3 }
  0xb2   : > { %v517_v12 = vpop.f32.mrf.mxu0 }
  0xb3   : > { %v546_v13 = vpop.f32.mrf.mxu1 }
  0xb4   : > { %v547_v14 = vadd.f32 %v546_v13, %v517_v12 }
  0xb7   : > { %v609_v23 = vpop.f32.mrf.mxu3 }
  0xba   : > { %v575_v16 = vpop.f32.mrf.mxu2  ;;  %v519_v18 = vpop.f32.mrf.mxu0 }
  0xbb   : > { %v576_v17 = vadd.f32 %v575_v16, %v547_v14  ;;  %v548_v19 = vpop.f32.mrf.mxu1 }
  0xbc   : > { %v549_v21 = vadd.f32 %v548_v19, %v519_v18 }
  0xbd   : > { %v605_v20 = vadd.f32 %v604_v11, %v576_v17 }
  0xbf   : > { %624 = vst [vmem:[%s1383_s7] sm:$0xff] %v605_v20  ;;  %v611_v33 = vpop.f32.mrf.mxu3  ;;  %v645_v59 = vmul.f32 %v605_v20, %v605_v20 }
  0xc2   : > { %v577_v22 = vpop.f32.mrf.mxu2  ;;  %v522_v25 = vpop.f32.mrf.mxu0 }
  0xc3   : > { %v578_v24 = vadd.f32 %v577_v22, %v549_v21  ;;  %v551_v26 = vpop.f32.mrf.mxu1 }
  0xc4   : > { %v552_v28 = vadd.f32 %v551_v26, %v522_v25 }
  0xc5   : > { %v607_v27 = vadd.f32 %v606_v15, %v578_v24 }
  0xc7   : > { %625 = vst [vmem:[%s1383_s7 + $0x8] sm:$0xff] %v607_v27  ;;  %v614_v41 = vpop.f32.mrf.mxu3  ;;  %v646_v56 = vmul.f32 %v607_v27, %v607_v27  ;;  %v632_v60 = vadd.f32 %v607_v27, %v605_v20 }
  0xc9   : > { %v653_v63 = vadd.f32 %v646_v56, %v645_v59 }
  0xca   : > { %v580_v29 = vpop.f32.mrf.mxu2  ;;  %v524_v31 = vpop.f32.mrf.mxu0 }
  0xcb   : > { %v581_v30 = vadd.f32 %v580_v29, %v552_v28  ;;  %v553_v32 = vpop.f32.mrf.mxu1 }
  0xcc   : > { %v554_v35 = vadd.f32 %v553_v32, %v524_v31 }
  0xcd   : > { %v610_v34 = vadd.f32 %v609_v23, %v581_v30 }
  0xcf   : > { %626 = vst [vmem:[%s1383_s7 + $0x10] sm:$0xff] %v610_v34  ;;  %v616_v48 = vpop.f32.mrf.mxu3  ;;  %v647_v61 = vmul.f32 %v610_v34, %v610_v34  ;;  %v633_v0 = vadd.f32 %v632_v60, %v610_v34 }
  0xd1   : > { %v654_v5 = vadd.f32 %v653_v63, %v647_v61 }
  0xd2   : > { %v582_v36 = vpop.f32.mrf.mxu2  ;;  %v527_v38 = vpop.f32.mrf.mxu0 }
  0xd3   : > { %v583_v37 = vadd.f32 %v582_v36, %v554_v35  ;;  %v556_v39 = vpop.f32.mrf.mxu1 }
  0xd4   : > { %v557_v42 = vadd.f32 %v556_v39, %v527_v38 }
  0xd5   : > { %v612_v40 = vadd.f32 %v611_v33, %v583_v37 }
  0xd7   : > { %627 = vst [vmem:[%s1383_s7 + $0x18] sm:$0xff] %v612_v40  ;;  %v619_v57 = vpop.f32.mrf.mxu3  ;;  %v648_v1 = vmul.f32 %v612_v40, %v612_v40  ;;  %v634_v6 = vadd.f32 %v633_v0, %v612_v40 }
  0xd9   : > { %v655_v8 = vadd.f32 %v654_v5, %v648_v1 }
  0xda   : > { %v585_v43 = vpop.f32.mrf.mxu2  ;;  %v529_v45 = vpop.f32.mrf.mxu0 }
  0xdb   : > { %v586_v44 = vadd.f32 %v585_v43, %v557_v42  ;;  %v558_v46 = vpop.f32.mrf.mxu1 }
  0xdc   : > { %v559_v49 = vadd.f32 %v558_v46, %v529_v45 }
  0xdd   : > { %v615_v47 = vadd.f32 %v614_v41, %v586_v44 }
  0xdf   : > { %628 = vst [vmem:[%s1383_s7 + $0x20] sm:$0xff] %v615_v47  ;;  %v649_v7 = vmul.f32 %v615_v47, %v615_v47  ;;  %v635_v9 = vadd.f32 %v634_v6, %v615_v47  ;;  %v621_v17 = vpop.f32.mrf.mxu3 }
  0xe1   : > { %v656_v13 = vadd.f32 %v655_v8, %v649_v7 }
  0xe2   : > { %v587_v50 = vpop.f32.mrf.mxu2  ;;  %v532_v52 = vpop.f32.mrf.mxu0 }
  0xe3   : > { %v588_v51 = vadd.f32 %v587_v50, %v559_v49  ;;  %v561_v53 = vpop.f32.mrf.mxu1 }
  0xe4   : > { %v562_v55 = vadd.f32 %v561_v53, %v532_v52 }
  0xe5   : > { %v617_v54 = vadd.f32 %v616_v48, %v588_v51 }
  0xe7   : > { %629 = vst [vmem:[%s1383_s7 + $0x28] sm:$0xff] %v617_v54  ;;  %v650_v10 = vmul.f32 %v617_v54, %v617_v54  ;;  %v636_v14 = vadd.f32 %v635_v9, %v617_v54 }
  0xe9   : > { %v657_v18 = vadd.f32 %v656_v13, %v650_v10 }
  0xea   : > { %v590_v58 = vpop.f32.mrf.mxu2  ;;  %v534_v3 = vpop.f32.mrf.mxu0 }
  0xeb   : > { %v591_v62 = vadd.f32 %v590_v58, %v562_v55  ;;  %v563_v4 = vpop.f32.mrf.mxu1 }
  0xec   : > { %v564_v11 = vadd.f32 %v563_v4, %v534_v3 }
  0xed   : > { %v620_v2 = vadd.f32 %v619_v57, %v591_v62 }
  0xef   : > { %630 = vst [vmem:[%s1383_s7 + $0x30] sm:$0xff] %v620_v2  ;;  %v651_v15 = vmul.f32 %v620_v2, %v620_v2  ;;  %v637_v19 = vadd.f32 %v636_v14, %v620_v2 }
  0xf1   : > { %v658_v21 = vadd.f32 %v657_v18, %v651_v15 }
  0xf2   : > { %v592_v12 = vpop.f32.mrf.mxu2 }
  0xf3   : > { %v593_v16 = vadd.f32 %v592_v12, %v564_v11 }
  0xf5   : > { %v622_v20 = vadd.f32 %v621_v17, %v593_v16 }
  0xf7   : > { %631 = vst [vmem:[%s1383_s7 + $0x38] sm:$0xff] %v622_v20  ;;  %v638_v22 = vadd.f32 %v637_v19, %v622_v20  ;;  %v652_v23 = vmul.f32 %v622_v20, %v622_v20 }
  0xf8   : > { %1113 = shalt.err (!%p1110_p3)
}
  0xf9   : > { %s1182_s6 = smov 128   ;;  %s1183_s9 = smov 8   ;;  %v639_v24 = vrot.slane %v638_v22, 4  ;;  %v659_v25 = vadd.f32 %v658_v21, %v652_v23  ;;  %v666_v28 = vlaneseq }
  0xfa   : > { %1040 = dma.vmem_to_hbm [thread:$0]  (%p1242_p5), %s692_s16, 1024, %s694_s20, %s674_s24, %s1182_s6, %s1182_s6, %s1183_s9  }
  0xfb   : > { %v640_v26 = vadd.f32 %v639_v24, %v638_v22  ;;  %v660_v27 = vrot.slane %v659_v25, 4  ;;  %s808_s7 = sshll.u32 %s1380_s8, 3  ;;  %v667_v33 = vshrl.u32 %v666_v28, 7  ;;  %s706_s17 = scalar_lea.hbm %s1445_s3, %s1262_s30 }
  0xfc   : > { %s177_s19 = scalar_lea.vmem [#allocation4], %s808_s7  ;;  %s710_s20 = sshll.u32 %s706_s17, 4  ;;  %s711_s20 = int_to_ptr.hbm [resolvable:$true] %s710_s20 }
  0xfd   : > { %v641_v29 = vrot.slane %v640_v26, 2  ;;  %v661_v30 = vadd.f32 %v660_v27, %v659_v25  ;;  %vm669_vm1 = vcmp.eq.s32.totalorder %v667_v33, 1  ;;  %s708_s16 = sshll.u32 %s177_s19, 4  ;;  %vm668_vm2 = vcmp.eq.s32.totalorder %v667_v33, 0  ;;  %s679_s24 = scalar_lea.sflag [#allocation5], %s1380_s8  ;;  %s709_s16 = int_to_ptr.vmem [resolvable:$true] %s708_s16 }
  0xfe   : > { %s1128_s25 = sshra.s32 %s711_s20, 4  ;;  %s1134_s28 = scalar_lea.hbm %s1445_s3, 32  ;;  %s1129_s25 = int_to_ptr.hbm [resolvable:$true] %s1128_s25 }
  0xff   : > { %v642_v31 = vadd.f32 %v641_v29, %v640_v26  ;;  %v662_v32 = vrot.slane %v661_v30, 2  ;;  %s1130_s26 = scalar_lea.hbm %s1129_s25, 8  ;;  %p1135_p9 = scmp.lt.s32.totalorder %s1129_s25, %s1445_s3 }
 0x100   : > { %p1131_p4 = scmp.ne.s32.totalorder %s1129_s25, %s1130_s26  ;;  %p1136_p10 = scmp.lt.s32.totalorder %s1134_s28, %s1130_s26 }
 0x101   : > { %v663_v34 = vadd.f32 %v662_v32, %v661_v30  ;;  %v643_v35 = vrot.slane %v642_v31, 1 }
 0x102   : > { %p1132_p7 = pnand %p1131_p4, %p1242_p5  ;;  %p1137_p11 = por %p1136_p10, %p1135_p9 }
 0x103   : > { %v664_v36 = vrot.slane %v663_v34, 1  ;;  %v644_v38 = vadd.f32 %v643_v35, %v642_v31 }
 0x104   : > { %p1133_p8 = pneg %p1132_p7 }
 0x105   : > { %v665_v37 = vadd.f32 %v664_v36, %v663_v34 }
 0x106   : > { %p1138_p12 = pnand %p1137_p11, %p1133_p8 }
 0x107   : > { %v670_v39 = vsel %vm669_vm1, %v665_v37, 0.0 }
 0x108   : > { %v671_v40 = vsel %vm668_vm2, %v644_v38, %v670_v39 }
 0x109   : > { %672 = vst [vmem:[%s177_s19] sm:$0xff] %v671_v40 }
 0x10a   : > { %1141 = shalt.err (!%p1138_p12)
}
 0x10b   : > { %1041 = dma.vmem_to_hbm [thread:$0]  (%p1242_p5), %s709_s16, 128, %s711_s20, %s679_s24  }
 0x10c PF: > { %p1051_p13 = scmp.ge.s32.totalorder %s1180_s15, 2  ;;  %s722_s8 = sand.u32 1, %s1168_s12  }
 0x10d   : > { %s723_s5 = scalar_lea.sflag [#allocation3], %s722_s8 }
 0x10e   : > { %p1045_p0 = pnand %p1051_p13, %p1246_p6 }
 0x110   : > { %p1046_p1 = pneg %p1045_p0 }
 0x112   : > { %1159 = dma.done.wait (%p1046_p1), %s723_s5, 1024  }
 0x113   : > { %1161 = vsyncadd (%p1046_p1), %s723_s5, 4294966272  ;;  %s733_s6 = scalar_lea.sflag [#allocation5], %s722_s8 }
 0x114   : > { %1163 = dma.done.wait (%p1046_p1), %s733_s6, 128  }
 0x115   : > { %1165 = vsyncadd (%p1046_p1), %s733_s6, 4294967168  ;;  %p17_p5 = scmp.ge.s32.totalorder %s1229_s18, 6   ;;  %s1448_s12 = smov %s1172_s13 }
 0x116   : > { %s1449_s13 = smov %s1176_s14  ;;  %s1450_s14 = smov %s1240_s21 }
 0x117   : > { %s1451_s15 = smov %s1229_s18  ;;  %19 = sbr.rel (!%p17_p5) target bundleno = 5 (0x5), region = 80 }
 0x11c   :  { %739 = vsyncpa [#allocation3], 1 }
 0x11d   :  { %741 = vsyncpa [#allocation3 + $0x1], 1 }
 0x11e   :  { %742 = vsyncpa [#allocation5], 1 }
 0x11f   :  { %744 = vsyncpa [#allocation5 + $0x1], 1 }

</bundles_post_ra>
